<compile_context>
chip_gen: v7x
topology: tpu7x:2x2x1
jax: 0.10.0
libtpu: 0.0.40
codegen_flags: <defaults>
</compile_context>

<pallas_src>
import math
from functools import partial

import jax
import jax.numpy as jnp
from jax.experimental import pallas as pl
from jax.experimental.pallas import tpu as pltpu

EPS = 1e-5


def residual_block_kernel(x_ref, w1_ref, g1_ref, b1_ref, w2_ref, g2_ref, b2_ref,
                          out_ref, pad_ref, *, C):
    B, H, WC = x_ref.shape
    BH = B * H
    W = WC // C
    inv_n = 1.0 / float(BH * W)          # BN sample count per channel: B*H*W

    x3 = x_ref[...]                      # (B, H, W*C) f32, lane-dense

    # Zero the 2-row top/bottom vertical halos exactly once (per batch image).
    pad_ref[:, 0:2, :] = jnp.zeros((B, 2, WC), pad_ref.dtype)
    pad_ref[:, H + 2:H + 4, :] = jnp.zeros((B, 2, WC), pad_ref.dtype)

    def conv(act, w_ref):
        """Merged 3x3+5x5 'same' conv as ONE K-stacked MXU matmul.

        The activation is written once into the halo-padded scratch; the 5
        vertical taps are overlapping static row-windows of that scratch,
        gathered lane-adjacent (128-lane aligned copies) into a (B*H, 5*W*C)
        LHS.  The whole stage is then a single (BH, 5*WC)@(5*WC, WC) bf16
        matmul with f32 accumulation: no per-tap zero fills, no shifted-slab
        copies, no per-tap MRF pop + VPU add.
        """
        pad_ref[:, 2:H + 2, :] = act
        lhs = jnp.concatenate(
            [pad_ref[:, kh:kh + H, :].reshape(BH, WC) for kh in range(5)], axis=1)
        return jnp.dot(lhs.astype(jnp.bfloat16), w_ref[...],
                       preferred_element_type=jnp.float32)        # (BH, WC) f32

    def lane_fold(v):
        """Sum the W lane-groups of width C with a log2(W)-step circular roll
        butterfly on the XLU.  Every lane ends up holding its channel's total,
        i.e. the per-channel reduction is already broadcast back onto the fused
        W*C lane axis -> no MXU gsum/gbc matmuls, stats stay f32."""
        s = WC // 2
        while s >= C:
            v = v + pltpu.roll(v, shift=s, axis=1)
            s //= 2
        return v

    def bn_train(y, gamma, beta):
        """BatchNorm2d (training mode, biased variance), two-pass for numerical
        stability, entirely f32 on the VPU/XLU."""
        mean_l = lane_fold(jnp.sum(y, axis=0, keepdims=True)) * inv_n      # (1, WC)
        yc = y - mean_l
        var_l = lane_fold(jnp.sum(yc * yc, axis=0, keepdims=True)) * inv_n
        inv_l = jax.lax.rsqrt(var_l + EPS)
        return yc * (inv_l * gamma) + beta

    # --- stage 1: merged conv1a/conv1b -> bn1 -> relu ---
    y1 = conv(x3, w1_ref)
    y1 = jnp.maximum(bn_train(y1, g1_ref[...], b1_ref[...]), 0.0)

    # --- stage 2: merged conv2a/conv2b -> bn2 -> +input -> relu ---
    y2 = conv(y1.reshape(B, H, WC), w2_ref)
    y2 = bn_train(y2, g2_ref[...], b2_ref[...]) + x3.reshape(BH, WC)
    out_ref[...] = jnp.maximum(y2, 0.0).reshape(B, H, WC)


def _merge_and_band_weights(w3, w5, W):
    """Merge HWIO 3x3 (pad=1 -> out channels [0:C/2]) and 5x5 (pad=2 -> [C/2:C])
    convs into one centered (5,5,C,C) weight, fold the horizontal taps + width
    zero-padding into banded lane-dense (W*C, W*C) matrices, and K-stack the 5
    vertical taps into a single (5*W*C, W*C) bf16 MXU operand."""
    C = w3.shape[2]
    wm = jnp.zeros((5, 5, C, C), jnp.float32)
    wm = wm.at[1:4, 1:4, :, : C // 2].set(w3)      # 3x3 taps centered in the 5x5
    wm = wm.at[:, :, :, C // 2:].set(w5)
    WC = W * C
    wb = jnp.zeros((5, WC, WC), jnp.float32)
    for w_out in range(W):
        for kw in range(5):
            w_in = w_out + kw - 2
            if 0 <= w_in < W:
                wb = wb.at[:, w_in * C:(w_in + 1) * C,
                           w_out * C:(w_out + 1) * C].set(wm[:, kw])
    return wb.reshape(5 * WC, WC).astype(jnp.bfloat16)   # K-stacked bf16 operand


def residual_block_pallas(x, params):
    B, H, W, C = x.shape
    WC = W * C                 # fused lane axis: 8*16 = 128 -> fully lane-dense
    assert W & (W - 1) == 0, "lane-group butterfly fold needs W to be a power of two"
    # TODO(synk): for larger workloads, tile over B / B*H with a grid (+ two-pass
    # cross-tile BN reduction) and tile the banded-weight WC axis for v7x's VMEM.

    x2 = x.reshape(B, H, WC)
    w1 = _merge_and_band_weights(params["w1a"], params["w1b"], W)
    w2 = _merge_and_band_weights(params["w2a"], params["w2b"], W)
    # per-channel BN affine params tiled onto the fused W*C lane axis
    g1 = jnp.tile(params["g1"], W).reshape(1, WC)
    b1 = jnp.tile(params["b1"], W).reshape(1, WC)
    g2 = jnp.tile(params["g2"], W).reshape(1, WC)
    b2 = jnp.tile(params["b2"], W).reshape(1, WC)

    args = (x2, w1, g1, b1, w2, g2, b2)
    vmem = pl.BlockSpec(memory_space=pltpu.MemorySpace.VMEM)
    out = pl.pallas_call(
        partial(residual_block_kernel, C=C),
        out_shape=jax.ShapeDtypeStruct((B, H, WC), jnp.float32),
        in_specs=[vmem] * len(args),
        out_specs=vmem,
        # f32 halo scratch keeps the odd-sublane-offset row-window slices on the
        # native (8,128)-tile path; only ~12 KB here (switch to bf16 at scale).
        scratch_shapes=[pltpu.VMEM((B, H + 4, WC), jnp.float32)],
    )(*args)
    return out.reshape(B, H, W, C)


# ---------------- pure-JAX reference (for correctness check) ----------------
def _conv_ref(x, w, pad):
    return jax.lax.conv_general_dilated(
        x, w, window_strides=(1, 1), padding=[(pad, pad), (pad, pad)],
        dimension_numbers=("NHWC", "HWIO", "NHWC"),
        precision=jax.lax.Precision.HIGHEST)


def _bn_ref(x, g, b):
    mean = jnp.mean(x, axis=(0, 1, 2), keepdims=True)
    var = jnp.mean((x - mean) ** 2, axis=(0, 1, 2), keepdims=True)
    return (x - mean) * jax.lax.rsqrt(var + EPS) * g + b


def residual_block_ref(x, p):
    y = jnp.concatenate([_conv_ref(x, p["w1a"], 1), _conv_ref(x, p["w1b"], 2)], axis=-1)
    y = jnp.maximum(_bn_ref(y, p["g1"], p["b1"]), 0.0)
    y2 = jnp.concatenate([_conv_ref(y, p["w2a"], 1), _conv_ref(y, p["w2b"], 2)], axis=-1)
    y2 = _bn_ref(y2, p["g2"], p["b2"]) + x
    return jnp.maximum(y2, 0.0)


if __name__ == "__main__":
    B, H, W, C = 2, 8, 8, 16          # channel=16 (module default); W*C = 128 lanes

    key = jax.random.PRNGKey(0)
    ks = jax.random.split(key, 9)

    def init_w(k, shape, fan_in):
        bound = 1.0 / math.sqrt(fan_in)
        return jax.random.uniform(k, shape, jnp.float32, -bound, bound)

    params = {
        "w1a": init_w(ks[0], (3, 3, C, C // 2), C * 9),
        "w1b": init_w(ks[1], (5, 5, C, C // 2), C * 25),
        "g1": 1.0 + 0.1 * jax.random.normal(ks[2], (C,), jnp.float32),
        "b1": 0.1 * jax.random.normal(ks[3], (C,), jnp.float32),
        "w2a": init_w(ks[4], (3, 3, C, C // 2), C * 9),
        "w2b": init_w(ks[5], (5, 5, C, C // 2), C * 25),
        "g2": 1.0 + 0.1 * jax.random.normal(ks[6], (C,), jnp.float32),
        "b2": 0.1 * jax.random.normal(ks[7], (C,), jnp.float32),
    }
    x = jax.random.normal(ks[8], (B, H, W, C), jnp.float32)

    out = jax.block_until_ready(residual_block_pallas(x, params))
    ref = jax.block_until_ready(residual_block_ref(x, params))

    assert out.shape == (B, H, W, C)
    # bf16 MXU operands with f32 accumulation -> slightly looser tolerance
    assert jnp.allclose(out, ref, atol=3e-2, rtol=2e-2), "mismatch vs JAX reference"
    print("KERNEL_OK")
</pallas_src>

<mosaic_0001>
module attributes {stable_mosaic.version = 11 : i64} {
  func.func @residual_block_kernel(%arg0: memref<2x8x128xf32, #tpu.memory_space<vmem>>, %arg1: memref<640x128xbf16, #tpu.memory_space<vmem>>, %arg2: memref<1x128xf32, #tpu.memory_space<vmem>>, %arg3: memref<1x128xf32, #tpu.memory_space<vmem>>, %arg4: memref<640x128xbf16, #tpu.memory_space<vmem>>, %arg5: memref<1x128xf32, #tpu.memory_space<vmem>>, %arg6: memref<1x128xf32, #tpu.memory_space<vmem>>, %arg7: memref<2x8x128xf32, #tpu.memory_space<vmem>>, %arg8: memref<2x12x128xf32, #tpu.memory_space<vmem>>) attributes {dimension_semantics = [], scalar_prefetch = 0 : i64, scratch_operands = 1 : i64, tpu.core_type = #tpu.core_type<tc>} {
    %c0 = arith.constant 0 : index
    %c0_0 = arith.constant 0 : index
    %c0_1 = arith.constant 0 : index
    %0 = vector.load %arg0[%c0, %c0_0, %c0_1] : memref<2x8x128xf32, #tpu.memory_space<vmem>>, vector<2x8x128xf32>
    %cst = arith.constant 0.000000e+00 : f32
    %1 = vector.broadcast %cst : f32 to vector<2x2x128xf32>
    %c0_2 = arith.constant 0 : index
    %c0_3 = arith.constant 0 : index
    %c0_4 = arith.constant 0 : index
    %2 = vector.load %arg8[%c0_2, %c0_3, %c0_4] : memref<2x12x128xf32, #tpu.memory_space<vmem>>, vector<2x2x128xf32>
    tpu.vector_store %arg8[%c0_2, %c0_3, %c0_4], %1 {strides = array<i32>} : memref<2x12x128xf32, #tpu.memory_space<vmem>>, vector<2x2x128xf32>,
    %cst_5 = arith.constant 0.000000e+00 : f32
    %3 = vector.broadcast %cst_5 : f32 to vector<2x2x128xf32>
    %c0_6 = arith.constant 0 : index
    %c10 = arith.constant 10 : index
    %c0_7 = arith.constant 0 : index
    %4 = vector.load %arg8[%c0_6, %c10, %c0_7] : memref<2x12x128xf32, #tpu.memory_space<vmem>>, vector<2x2x128xf32>
    tpu.vector_store %arg8[%c0_6, %c10, %c0_7], %3 {strides = array<i32>} : memref<2x12x128xf32, #tpu.memory_space<vmem>>, vector<2x2x128xf32>,
    %c0_8 = arith.constant 0 : index
    %c2 = arith.constant 2 : index
    %c0_9 = arith.constant 0 : index
    %5 = vector.load %arg8[%c0_8, %c2, %c0_9] : memref<2x12x128xf32, #tpu.memory_space<vmem>>, vector<2x8x128xf32>
    tpu.vector_store %arg8[%c0_8, %c2, %c0_9], %0 {strides = array<i32>} : memref<2x12x128xf32, #tpu.memory_space<vmem>>, vector<2x8x128xf32>,
    %c0_10 = arith.constant 0 : index
    %c0_11 = arith.constant 0 : index
    %c0_12 = arith.constant 0 : index
    %6 = vector.load %arg8[%c0_10, %c0_11, %c0_12] : memref<2x12x128xf32, #tpu.memory_space<vmem>>, vector<2x8x128xf32>
    %7 = vector.shape_cast %6 : vector<2x8x128xf32> to vector<16x128xf32>
    %c0_13 = arith.constant 0 : index
    %c1 = arith.constant 1 : index
    %c0_14 = arith.constant 0 : index
    %8 = vector.load %arg8[%c0_13, %c1, %c0_14] : memref<2x12x128xf32, #tpu.memory_space<vmem>>, vector<2x8x128xf32>
    %9 = vector.shape_cast %8 : vector<2x8x128xf32> to vector<16x128xf32>
    %c0_15 = arith.constant 0 : index
    %c2_16 = arith.constant 2 : index
    %c0_17 = arith.constant 0 : index
    %10 = vector.load %arg8[%c0_15, %c2_16, %c0_17] : memref<2x12x128xf32, #tpu.memory_space<vmem>>, vector<2x8x128xf32>
    %11 = vector.shape_cast %10 : vector<2x8x128xf32> to vector<16x128xf32>
    %c0_18 = arith.constant 0 : index
    %c3 = arith.constant 3 : index
    %c0_19 = arith.constant 0 : index
    %12 = vector.load %arg8[%c0_18, %c3, %c0_19] : memref<2x12x128xf32, #tpu.memory_space<vmem>>, vector<2x8x128xf32>
    %13 = vector.shape_cast %12 : vector<2x8x128xf32> to vector<16x128xf32>
    %c0_20 = arith.constant 0 : index
    %c4 = arith.constant 4 : index
    %c0_21 = arith.constant 0 : index
    %14 = vector.load %arg8[%c0_20, %c4, %c0_21] : memref<2x12x128xf32, #tpu.memory_space<vmem>>, vector<2x8x128xf32>
    %15 = vector.shape_cast %14 : vector<2x8x128xf32> to vector<16x128xf32>
    %16 = tpu.concatenate %7, %9, %11, %13, %15 in 1 : vector<16x128xf32>, vector<16x128xf32>, vector<16x128xf32>, vector<16x128xf32>, vector<16x128xf32> -> vector<16x640xf32>
    %17 = arith.truncf %16 : vector<16x640xf32> to vector<16x640xbf16>
    %c0_22 = arith.constant 0 : index
    %c0_23 = arith.constant 0 : index
    %18 = vector.load %arg1[%c0_22, %c0_23] : memref<640x128xbf16, #tpu.memory_space<vmem>>, vector<640x128xbf16>
    %cst_24 = arith.constant dense<0.000000e+00> : vector<16x128xf32>
    %19 = tpu.matmul %17, %18, %cst_24 {dimension_numbers = #tpu.dot_dimension_numbers<[1], [0], [0], [1], [0, 0, 1, 1], [], []>} : vector<16x640xbf16>, vector<640x128xbf16>, vector<16x128xf32> -> vector<16x128xf32>
    %c0_25 = arith.constant 0 : index
    %c0_26 = arith.constant 0 : index
    %20 = vector.load %arg2[%c0_25, %c0_26] : memref<1x128xf32, #tpu.memory_space<vmem>>, vector<1x128xf32>
    %c0_27 = arith.constant 0 : index
    %c0_28 = arith.constant 0 : index
    %21 = vector.load %arg3[%c0_27, %c0_28] : memref<1x128xf32, #tpu.memory_space<vmem>>, vector<1x128xf32>
    %cst_29 = arith.constant dense<0.000000e+00> : vector<128xf32>
    %22 = vector.multi_reduction <add>, %19, %cst_29 [0] : vector<16x128xf32> to vector<128xf32>
    %23 = vector.shape_cast %22 : vector<128xf32> to vector<1x128xf32>
    %c64_i32 = arith.constant 64 : i32
    %24 = tpu.dynamic_rotate %23 by %c64_i32 dim 1 : vector<1x128xf32>, i32 -> vector<1x128xf32>
    %25 = arith.addf %23, %24 : vector<1x128xf32>
    %c32_i32 = arith.constant 32 : i32
    %26 = tpu.dynamic_rotate %25 by %c32_i32 dim 1 : vector<1x128xf32>, i32 -> vector<1x128xf32>
    %27 = arith.addf %25, %26 : vector<1x128xf32>
    %c16_i32 = arith.constant 16 : i32
    %28 = tpu.dynamic_rotate %27 by %c16_i32 dim 1 : vector<1x128xf32>, i32 -> vector<1x128xf32>
    %29 = arith.addf %27, %28 : vector<1x128xf32>
    %cst_30 = arith.constant 7.812500e-03 : f32
    %30 = vector.broadcast %cst_30 : f32 to vector<1x128xf32>
    %31 = arith.mulf %29, %30 : vector<1x128xf32>
    %32 = vector.broadcast %31 : vector<1x128xf32> to vector<16x128xf32>
    %33 = arith.subf %19, %32 : vector<16x128xf32>
    %34 = arith.mulf %33, %33 : vector<16x128xf32>
    %cst_31 = arith.constant dense<0.000000e+00> : vector<128xf32>
    %35 = vector.multi_reduction <add>, %34, %cst_31 [0] : vector<16x128xf32> to vector<128xf32>
    %36 = vector.shape_cast %35 : vector<128xf32> to vector<1x128xf32>
    %c64_i32_32 = arith.constant 64 : i32
    %37 = tpu.dynamic_rotate %36 by %c64_i32_32 dim 1 : vector<1x128xf32>, i32 -> vector<1x128xf32>
    %38 = arith.addf %36, %37 : vector<1x128xf32>
    %c32_i32_33 = arith.constant 32 : i32
    %39 = tpu.dynamic_rotate %38 by %c32_i32_33 dim 1 : vector<1x128xf32>, i32 -> vector<1x128xf32>
    %40 = arith.addf %38, %39 : vector<1x128xf32>
    %c16_i32_34 = arith.constant 16 : i32
    %41 = tpu.dynamic_rotate %40 by %c16_i32_34 dim 1 : vector<1x128xf32>, i32 -> vector<1x128xf32>
    %42 = arith.addf %40, %41 : vector<1x128xf32>
    %cst_35 = arith.constant 7.812500e-03 : f32
    %43 = vector.broadcast %cst_35 : f32 to vector<1x128xf32>
    %44 = arith.mulf %42, %43 : vector<1x128xf32>
    %cst_36 = arith.constant 9.99999974E-6 : f32
    %45 = vector.broadcast %cst_36 : f32 to vector<1x128xf32>
    %46 = arith.addf %44, %45 : vector<1x128xf32>
    %47 = math.rsqrt %46 : vector<1x128xf32>
    %48 = arith.mulf %47, %20 : vector<1x128xf32>
    %49 = vector.broadcast %48 : vector<1x128xf32> to vector<16x128xf32>
    %50 = arith.mulf %33, %49 : vector<16x128xf32>
    %51 = vector.broadcast %21 : vector<1x128xf32> to vector<16x128xf32>
    %52 = arith.addf %50, %51 : vector<16x128xf32>
    %cst_37 = arith.constant 0.000000e+00 : f32
    %53 = vector.broadcast %cst_37 : f32 to vector<16x128xf32>
    %54 = arith.maximumf %52, %53 : vector<16x128xf32>
    %55 = vector.shape_cast %54 : vector<16x128xf32> to vector<2x8x128xf32>
    %c0_38 = arith.constant 0 : index
    %c2_39 = arith.constant 2 : index
    %c0_40 = arith.constant 0 : index
    %56 = vector.load %arg8[%c0_38, %c2_39, %c0_40] : memref<2x12x128xf32, #tpu.memory_space<vmem>>, vector<2x8x128xf32>
    tpu.vector_store %arg8[%c0_38, %c2_39, %c0_40], %55 {strides = array<i32>} : memref<2x12x128xf32, #tpu.memory_space<vmem>>, vector<2x8x128xf32>,
    %c0_41 = arith.constant 0 : index
    %c0_42 = arith.constant 0 : index
    %c0_43 = arith.constant 0 : index
    %57 = vector.load %arg8[%c0_41, %c0_42, %c0_43] : memref<2x12x128xf32, #tpu.memory_space<vmem>>, vector<2x8x128xf32>
    %58 = vector.shape_cast %57 : vector<2x8x128xf32> to vector<16x128xf32>
    %c0_44 = arith.constant 0 : index
    %c1_45 = arith.constant 1 : index
    %c0_46 = arith.constant 0 : index
    %59 = vector.load %arg8[%c0_44, %c1_45, %c0_46] : memref<2x12x128xf32, #tpu.memory_space<vmem>>, vector<2x8x128xf32>
    %60 = vector.shape_cast %59 : vector<2x8x128xf32> to vector<16x128xf32>
    %c0_47 = arith.constant 0 : index
    %c2_48 = arith.constant 2 : index
    %c0_49 = arith.constant 0 : index
    %61 = vector.load %arg8[%c0_47, %c2_48, %c0_49] : memref<2x12x128xf32, #tpu.memory_space<vmem>>, vector<2x8x128xf32>
    %62 = vector.shape_cast %61 : vector<2x8x128xf32> to vector<16x128xf32>
    %c0_50 = arith.constant 0 : index
    %c3_51 = arith.constant 3 : index
    %c0_52 = arith.constant 0 : index
    %63 = vector.load %arg8[%c0_50, %c3_51, %c0_52] : memref<2x12x128xf32, #tpu.memory_space<vmem>>, vector<2x8x128xf32>
    %64 = vector.shape_cast %63 : vector<2x8x128xf32> to vector<16x128xf32>
    %c0_53 = arith.constant 0 : index
    %c4_54 = arith.constant 4 : index
    %c0_55 = arith.constant 0 : index
    %65 = vector.load %arg8[%c0_53, %c4_54, %c0_55] : memref<2x12x128xf32, #tpu.memory_space<vmem>>, vector<2x8x128xf32>
    %66 = vector.shape_cast %65 : vector<2x8x128xf32> to vector<16x128xf32>
    %67 = tpu.concatenate %58, %60, %62, %64, %66 in 1 : vector<16x128xf32>, vector<16x128xf32>, vector<16x128xf32>, vector<16x128xf32>, vector<16x128xf32> -> vector<16x640xf32>
    %68 = arith.truncf %67 : vector<16x640xf32> to vector<16x640xbf16>
    %c0_56 = arith.constant 0 : index
    %c0_57 = arith.constant 0 : index
    %69 = vector.load %arg4[%c0_56, %c0_57] : memref<640x128xbf16, #tpu.memory_space<vmem>>, vector<640x128xbf16>
    %cst_58 = arith.constant dense<0.000000e+00> : vector<16x128xf32>
    %70 = tpu.matmul %68, %69, %cst_58 {dimension_numbers = #tpu.dot_dimension_numbers<[1], [0], [0], [1], [0, 0, 1, 1], [], []>} : vector<16x640xbf16>, vector<640x128xbf16>, vector<16x128xf32> -> vector<16x128xf32>
    %c0_59 = arith.constant 0 : index
    %c0_60 = arith.constant 0 : index
    %71 = vector.load %arg5[%c0_59, %c0_60] : memref<1x128xf32, #tpu.memory_space<vmem>>, vector<1x128xf32>
    %c0_61 = arith.constant 0 : index
    %c0_62 = arith.constant 0 : index
    %72 = vector.load %arg6[%c0_61, %c0_62] : memref<1x128xf32, #tpu.memory_space<vmem>>, vector<1x128xf32>
    %cst_63 = arith.constant dense<0.000000e+00> : vector<128xf32>
    %73 = vector.multi_reduction <add>, %70, %cst_63 [0] : vector<16x128xf32> to vector<128xf32>
    %74 = vector.shape_cast %73 : vector<128xf32> to vector<1x128xf32>
    %c64_i32_64 = arith.constant 64 : i32
    %75 = tpu.dynamic_rotate %74 by %c64_i32_64 dim 1 : vector<1x128xf32>, i32 -> vector<1x128xf32>
    %76 = arith.addf %74, %75 : vector<1x128xf32>
    %c32_i32_65 = arith.constant 32 : i32
    %77 = tpu.dynamic_rotate %76 by %c32_i32_65 dim 1 : vector<1x128xf32>, i32 -> vector<1x128xf32>
    %78 = arith.addf %76, %77 : vector<1x128xf32>
    %c16_i32_66 = arith.constant 16 : i32
    %79 = tpu.dynamic_rotate %78 by %c16_i32_66 dim 1 : vector<1x128xf32>, i32 -> vector<1x128xf32>
    %80 = arith.addf %78, %79 : vector<1x128xf32>
    %cst_67 = arith.constant 7.812500e-03 : f32
    %81 = vector.broadcast %cst_67 : f32 to vector<1x128xf32>
    %82 = arith.mulf %80, %81 : vector<1x128xf32>
    %83 = vector.broadcast %82 : vector<1x128xf32> to vector<16x128xf32>
    %84 = arith.subf %70, %83 : vector<16x128xf32>
    %85 = arith.mulf %84, %84 : vector<16x128xf32>
    %cst_68 = arith.constant dense<0.000000e+00> : vector<128xf32>
    %86 = vector.multi_reduction <add>, %85, %cst_68 [0] : vector<16x128xf32> to vector<128xf32>
    %87 = vector.shape_cast %86 : vector<128xf32> to vector<1x128xf32>
    %c64_i32_69 = arith.constant 64 : i32
    %88 = tpu.dynamic_rotate %87 by %c64_i32_69 dim 1 : vector<1x128xf32>, i32 -> vector<1x128xf32>
    %89 = arith.addf %87, %88 : vector<1x128xf32>
    %c32_i32_70 = arith.constant 32 : i32
    %90 = tpu.dynamic_rotate %89 by %c32_i32_70 dim 1 : vector<1x128xf32>, i32 -> vector<1x128xf32>
    %91 = arith.addf %89, %90 : vector<1x128xf32>
    %c16_i32_71 = arith.constant 16 : i32
    %92 = tpu.dynamic_rotate %91 by %c16_i32_71 dim 1 : vector<1x128xf32>, i32 -> vector<1x128xf32>
    %93 = arith.addf %91, %92 : vector<1x128xf32>
    %cst_72 = arith.constant 7.812500e-03 : f32
    %94 = vector.broadcast %cst_72 : f32 to vector<1x128xf32>
    %95 = arith.mulf %93, %94 : vector<1x128xf32>
    %cst_73 = arith.constant 9.99999974E-6 : f32
    %96 = vector.broadcast %cst_73 : f32 to vector<1x128xf32>
    %97 = arith.addf %95, %96 : vector<1x128xf32>
    %98 = math.rsqrt %97 : vector<1x128xf32>
    %99 = arith.mulf %98, %71 : vector<1x128xf32>
    %100 = vector.broadcast %99 : vector<1x128xf32> to vector<16x128xf32>
    %101 = arith.mulf %84, %100 : vector<16x128xf32>
    %102 = vector.broadcast %72 : vector<1x128xf32> to vector<16x128xf32>
    %103 = arith.addf %101, %102 : vector<16x128xf32>
    %104 = vector.shape_cast %0 : vector<2x8x128xf32> to vector<16x128xf32>
    %105 = arith.addf %103, %104 : vector<16x128xf32>
    %cst_74 = arith.constant 0.000000e+00 : f32
    %106 = vector.broadcast %cst_74 : f32 to vector<16x128xf32>
    %107 = arith.maximumf %105, %106 : vector<16x128xf32>
    %108 = vector.shape_cast %107 : vector<16x128xf32> to vector<2x8x128xf32>
    %c0_75 = arith.constant 0 : index
    %c0_76 = arith.constant 0 : index
    %c0_77 = arith.constant 0 : index
    %109 = vector.load %arg7[%c0_75, %c0_76, %c0_77] : memref<2x8x128xf32, #tpu.memory_space<vmem>>, vector<2x8x128xf32>
    tpu.vector_store %arg7[%c0_75, %c0_76, %c0_77], %108 {strides = array<i32>} : memref<2x8x128xf32, #tpu.memory_space<vmem>>, vector<2x8x128xf32>,
    return
  }
}

</mosaic_0001>

<bundles_post_ra>
// kernel: tpu_custom_call.1
= control target key start
LH: loop header
LB: loop body
LE: loop exit
PB: predicated region body
PF: predicated region fallthrough
CT: control target
= control target key end

     0   :  { %12 = vsyncpa [#allocation4], 0  ;;  %s1747_s0 = inlined_call_operand.hbm [shape: f32[2,8,128], index: 0, kind: input, shape index: {}]   ;;  %s1748_s1 = inlined_call_operand.hbm [shape: bf16[640,128], index: 1, kind: input, shape index: {}]   ;;  %s1749_s2 = inlined_call_operand.vmem [shape: f32[1,128], index: 2, kind: input, shape index: {}]   ;;  %s1750_s3 = inlined_call_operand.vmem [shape: f32[1,128], index: 3, kind: input, shape index: {}]   ;;  %s1751_s4 = inlined_call_operand.hbm [shape: bf16[640,128], index: 4, kind: input, shape index: {}]   ;;  %s1752_s5 = inlined_call_operand.vmem [shape: f32[1,128], index: 5, kind: input, shape index: {}]   ;;  %s1753_s6 = inlined_call_operand.vmem [shape: f32[1,128], index: 6, kind: input, shape index: {}]   ;;  %s1754_s7 = inlined_call_operand.hbm [shape: f32[2,8,128], index: 7, kind: output, shape index: {}]  }
   0x1   :  { %13 = vsyncpa [#allocation7], 0 }
   0x2   :  { %14 = vsyncpa [#allocation5], 0  ;;  %s1561_s24 = smov [#allocation6]   ;;  %s1467_s28 = scalar_lea.hbm %s1748_s1, 5120 }
   0x3   :  { %s32_s25 = sshll.u32 %s1561_s24, 4  ;;  %p1468_p0 = scmp.ne.s32.totalorder %s1748_s1, %s1467_s28  ;;  %s33_s25 = int_to_ptr.vmem [resolvable:$true] %s32_s25 }
   0x4   :  { %p1471_p1 = scmp.lt.u32.totalorder %s1467_s28, %s1748_s1 }
   0x6   :  { %p1473_p2 = pnand %p1471_p1, %p1468_p0 }
   0x8   :  { %1476 = shalt.err (!%p1473_p2)
}
   0x9   :  { %s1477_s10 = scalar_lea.vmem %s33_s25, 5120  ;;  %p1482_p4 = scmp.lt.s32.totalorder %s33_s25, %s33_s25 }
   0xa   :  { %p1478_p3 = scmp.ne.s32.totalorder %s33_s25, %s1477_s10  ;;  %p1483_p5 = scmp.lt.s32.totalorder %s1477_s10, %s1477_s10 }
   0xc   :  { %p1484_p6 = por %p1483_p5, %p1482_p4 }
   0xe   :  { %p1485_p7 = pnand %p1484_p6, %p1478_p3 }
  0x10   :  { %1488 = shalt.err (!%p1485_p7)
}
  0x11   :  { %s1562_s11 = smov 64   ;;  %s1563_s12 = smov 4  }
  0x12   :  { %38 = dma.hbm_to_vmem [thread:$0]  %s1748_s1, 5120, %s33_s25, [#allocation7], %s1562_s11, %s1562_s11, %s1563_s12  }
  0x13   :  { %s1564_s15 = smov [#allocation3]   ;;  %s1489_s19 = scalar_lea.hbm %s1747_s0, 256 }
  0x14   :  { %s20_s16 = sshll.u32 %s1564_s15, 4  ;;  %p1490_p8 = scmp.ne.s32.totalorder %s1747_s0, %s1489_s19  ;;  %s21_s16 = int_to_ptr.vmem [resolvable:$true] %s20_s16 }
  0x15   :  { %p1493_p9 = scmp.lt.u32.totalorder %s1489_s19, %s1747_s0 }
  0x17   :  { %p1495_p10 = pnand %p1493_p9, %p1490_p8 }
  0x19   :  { %1498 = shalt.err (!%p1495_p10)
}
  0x1a   :  { %s1499_s24 = scalar_lea.vmem %s21_s16, 256  ;;  %p1504_p12 = scmp.lt.s32.totalorder %s21_s16, %s21_s16 }
  0x1b   :  { %p1500_p11 = scmp.ne.s32.totalorder %s21_s16, %s1499_s24  ;;  %p1505_p13 = scmp.lt.s32.totalorder %s1499_s24, %s1499_s24 }
  0x1d   :  { %p1506_p0 = por %p1505_p13, %p1504_p12 }
  0x1f   :  { %p1507_p1 = pnand %p1506_p0, %p1500_p11 }
  0x21   :  { %1510 = shalt.err (!%p1507_p1)
}
  0x22   :  { %s1565_s1 = smov 128   ;;  %s1566_s25 = smov 8  }
  0x23   :  { %26 = dma.hbm_to_vmem [thread:$0]  %s1747_s0, 256, %s21_s16, [#allocation4], %s1565_s1, %s1565_s1, %s1566_s25  }
  0x24   :  { %s1567_s28 = smov [#allocation8]   ;;  %s1511_s9 = scalar_lea.hbm %s1751_s4, 5120 }
  0x25   :  { %s48_s29 = sshll.u32 %s1567_s28, 4  ;;  %p1512_p2 = scmp.ne.s32.totalorder %s1751_s4, %s1511_s9  ;;  %s49_s29 = int_to_ptr.vmem [resolvable:$true] %s48_s29 }
  0x26   :  { %p1515_p3 = scmp.lt.u32.totalorder %s1511_s9, %s1751_s4 }
  0x28   :  { %p1517_p4 = pnand %p1515_p3, %p1512_p2 }
  0x2a   :  { %1520 = shalt.err (!%p1517_p4)
}
  0x2b   :  { %s1521_s17 = scalar_lea.vmem %s49_s29, 5120  ;;  %p1526_p6 = scmp.lt.s32.totalorder %s49_s29, %s49_s29 }
  0x2c   :  { %p1522_p5 = scmp.ne.s32.totalorder %s49_s29, %s1521_s17  ;;  %p1527_p7 = scmp.lt.s32.totalorder %s1521_s17, %s1521_s17 }
  0x2e   :  { %p1528_p8 = por %p1527_p7, %p1526_p6 }
  0x30   :  { %p1529_p9 = pnand %p1528_p8, %p1522_p5 }
  0x32   :  { %1532 = shalt.err (!%p1529_p9)
}
  0x33   :  { %54 = dma.hbm_to_vmem [thread:$0]  %s1751_s4, 5120, %s49_s29, [#allocation7], %s1562_s11, %s1562_s11, %s1563_s12  }
  0x34   :  { %1555 = dma.done.wait [#allocation4], 256  }
  0x35   :  { %1556 = vsyncadd [#allocation4], 4294967040 }
  0x36   :  { %1557 = dma.done.wait [#allocation7], 10240  }
  0x37   :  { %1558 = vsyncadd [#allocation7], 4294957056  ;;  %v1568_v0 = vmov 0.0   ;;  %v1383_v1 = vld [vmem:[#allocation6 + $0x40] sm:$0xff]   ;;  %v1387_v5 = vld [vmem:[#allocation6 + $0x48] sm:$0xff]   ;;  %vm1569_vm0 = vmmov 0  }
  0x38   :  { %71 = vst [vmem:[#allocation2] sm:$0x3] %v1568_v0  ;;  %72 = vst [vmem:[#allocation2 + $0x10] sm:$0x3] %v1568_v0  ;;  %v1384_v2 = vld [vmem:[#allocation6 + $0xc0] sm:$0xff]   ;;  %1225 = vmatprep.subr.bf16.mxu0 %v1383_v1  ;;  %v1388_v6 = vld [vmem:[#allocation6 + $0xc8] sm:$0xff]  }
  0x39   :  { %73 = vst [vmem:[#allocation2 + $0xa] sm:$0x3] %v1568_v0  ;;  %74 = vst [vmem:[#allocation2 + $0x1a] sm:$0x3] %v1568_v0  ;;  %v1385_v3 = vld [vmem:[#allocation6] sm:$0xff]   ;;  %1247 = vmatprep.subr.bf16.mxu1 %v1384_v2  ;;  %v1389_v7 = vld [vmem:[#allocation6 + $0x8] sm:$0xff]  }
  0x3a   :  { %v1386_v4 = vld [vmem:[#allocation6 + $0x80] sm:$0xff]   ;;  %1226 = vmatpush3.bf16.msra.mxu0 %v1385_v3  ;;  %v1390_v8 = vld [vmem:[#allocation6 + $0x88] sm:$0xff]   ;;  %v1391_v9 = vld [vmem:[#allocation6 + $0x50] sm:$0xff]   ;;  %s1570_s4 = smov 32   ;;  %s1571_s12 = smov 16  }
  0x3b   :  { %1248 = vmatpush3.bf16.msra.mxu1 %v1386_v4  ;;  %1227 = vmatprep.subr.bf16.mxu0 %v1387_v5  ;;  %v1392_v10 = vld [vmem:[#allocation6 + $0xd0] sm:$0xff]   ;;  %v1395_v13 = vld [vmem:[#allocation6 + $0x58] sm:$0xff]   ;;  %v1399_v17 = vld [vmem:[#allocation6 + $0x60] sm:$0xff]   ;;  %s1572_s23 = smov [#allocation9]  }
  0x3c   :  { %1249 = vmatprep.subr.bf16.mxu1 %v1388_v6  ;;  %v1393_v11 = vld [vmem:[#allocation6 + $0x10] sm:$0xff]   ;;  %v1396_v14 = vld [vmem:[#allocation6 + $0xd8] sm:$0xff]   ;;  %v1400_v18 = vld [vmem:[#allocation6 + $0xe0] sm:$0xff]   ;;  %s1130_s24 = sshll.u32 %s1572_s23, 4  ;;  %s1131_s24 = int_to_ptr.vmem [resolvable:$true] %s1130_s24 }
  0x3d   :  { %v1394_v12 = vld [vmem:[#allocation6 + $0x90] sm:$0xff]   ;;  %v1397_v15 = vld [vmem:[#allocation6 + $0x18] sm:$0xff]   ;;  %v1401_v19 = vld [vmem:[#allocation6 + $0x20] sm:$0xff]   ;;  %p1538_p11 = scmp.lt.s32.totalorder %s1131_s24, %s1131_s24 }
  0x3e   :  { %1228 = vmatpush3.bf16.msra.mxu0 %v1389_v7  ;;  %v1398_v16 = vld [vmem:[#allocation6 + $0x98] sm:$0xff]   ;;  %v1402_v20 = vld [vmem:[#allocation6 + $0xa0] sm:$0xff]   ;;  %v1403_v21 = vld [vmem:[#allocation6 + $0x68] sm:$0xff]  }
  0x3f   :  { %1250 = vmatpush3.bf16.msra.mxu1 %v1390_v8  ;;  %1229 = vmatprep.subr.bf16.mxu0 %v1391_v9  ;;  %v1404_v22 = vld [vmem:[#allocation6 + $0xe8] sm:$0xff]   ;;  %v1407_v25 = vld [vmem:[#allocation6 + $0x70] sm:$0xff]   ;;  %v1411_v29 = vld [vmem:[#allocation6 + $0x78] sm:$0xff]  }
  0x40   :  { %1251 = vmatprep.subr.bf16.mxu1 %v1392_v10  ;;  %v1405_v23 = vld [vmem:[#allocation6 + $0x28] sm:$0xff]   ;;  %v1408_v26 = vld [vmem:[#allocation6 + $0xf0] sm:$0xff]   ;;  %v1412_v30 = vld [vmem:[#allocation6 + $0xf8] sm:$0xff]  }
  0x41   :  { %v1406_v24 = vld [vmem:[#allocation6 + $0xa8] sm:$0xff]   ;;  %v1409_v27 = vld [vmem:[#allocation6 + $0x30] sm:$0xff]   ;;  %v1413_v31 = vld [vmem:[#allocation6 + $0x38] sm:$0xff]  }
  0x42   :  { %1230 = vmatpush3.bf16.msra.mxu0 %v1393_v11  ;;  %v1410_v28 = vld [vmem:[#allocation6 + $0xb0] sm:$0xff]   ;;  %v1414_v32 = vld [vmem:[#allocation6 + $0xb8] sm:$0xff]   ;;  %v1415_v35 = vld [vmem:[#allocation6 + $0x100] sm:$0xff]  }
  0x43   :  { %1252 = vmatpush3.bf16.msra.mxu1 %v1394_v12  ;;  %1231 = vmatprep.subr.bf16.mxu0 %v1395_v13  ;;  %v1662_v33 = vld [vmem:[#allocation3] sm:$0xff]  ;;  %v1664_v34 = vld [vmem:[#allocation3 + $0x8] sm:$0xff]  ;;  %v1416_v46 = vld [vmem:[#allocation6 + $0x108] sm:$0xff]  }
  0x44   :  { %1253 = vmatprep.subr.bf16.mxu1 %v1396_v14  ;;  %75 = vst [vmem:[#allocation2 + $0x2] sm:$0xff] %v1662_v33  ;;  %76 = vst [vmem:[#allocation2 + $0x12] sm:$0xff] %v1664_v34  ;;  %v89_v43 = vpack.c.bf16 %v1664_v34, %v1662_v33  ;;  %v1417_v47 = vld [vmem:[#allocation6 + $0x110] sm:$0xff]   ;;  %v1418_v48 = vld [vmem:[#allocation6 + $0x118] sm:$0xff]  }
  0x45   :  { %v1419_v49 = vld [vmem:[#allocation6 + $0x120] sm:$0xff]   ;;  %v1420_v50 = vld [vmem:[#allocation6 + $0x128] sm:$0xff]   ;;  %v1421_v51 = vld [vmem:[#allocation6 + $0x130] sm:$0xff]  }
  0x46   :  { %1232 = vmatpush3.bf16.msra.mxu0 %v1397_v15  ;;  %v1422_v52 = vld [vmem:[#allocation6 + $0x138] sm:$0xff]  }
  0x47   :  { %1254 = vmatpush3.bf16.msra.mxu1 %v1398_v16  ;;  %1233 = vmatprep.subr.bf16.mxu0 %v1399_v17 }
  0x48   :  { %1255 = vmatprep.subr.bf16.mxu1 %v1400_v18 }
  0x4a   :  { %1234 = vmatpush3.bf16.msra.mxu0 %v1401_v19 }
  0x4b   :  { %1256 = vmatpush3.bf16.msra.mxu1 %v1402_v20  ;;  %1235 = vmatprep.subr.bf16.mxu0 %v1403_v21  ;;  %v79_v36 = vld [vmem:[#allocation2 + $0x1] sm:$0xff]  ;;  %v80_v37 = vld [vmem:[#allocation2 + $0x11] sm:$0xff] }
  0x4c   :  { %1257 = vmatprep.subr.bf16.mxu1 %v1404_v22  ;;  %v83_v38 = vld [vmem:[#allocation2 + $0x3] sm:$0xff]  ;;  %v88_v39 = vpack.c.bf16 %v80_v37, %v79_v36  ;;  %v84_v40 = vld [vmem:[#allocation2 + $0x13] sm:$0xff] }
  0x4d   :  { %v77_v41 = vld [vmem:[#allocation2] sm:$0xff]  ;;  %v78_v42 = vld [vmem:[#allocation2 + $0x10] sm:$0xff]  ;;  %v90_v44 = vpack.c.bf16 %v84_v40, %v83_v38 }
  0x4e   :  { %1236 = vmatpush3.bf16.msra.mxu0 %v1405_v23  ;;  %v87_v45 = vpack.c.bf16 %v78_v42, %v77_v41  ;;  %444 = vmatprep.mubr.bf16.mxu0 %v88_v39  ;;  %v85_v53 = vld [vmem:[#allocation2 + $0x4] sm:$0xff]  ;;  %v86_v54 = vld [vmem:[#allocation2 + $0x14] sm:$0xff] }
  0x4f   :  { %1258 = vmatpush3.bf16.msra.mxu1 %v1406_v24  ;;  %1237 = vmatprep.subr.bf16.mxu0 %v1407_v25  ;;  %v91_v55 = vpack.c.bf16 %v86_v54, %v85_v53  ;;  %v554_v24 = vlaneseq  ;;  %v1430_v54 = vld [vmem:[#allocation8 + $0x88] sm:$0xff]  }
  0x50   :  { %1259 = vmatprep.subr.bf16.mxu1 %v1408_v26  ;;  %485 = vmatprep.mubr.bf16.mxu1 %v90_v44 }
  0x51   :  { %v555_v25 = vshrl.u32 %v554_v24, 7 }
  0x52   :  { %1238 = vmatpush3.bf16.msra.mxu0 %v1409_v27 }
  0x53   :  { %1260 = vmatpush3.bf16.msra.mxu1 %v1410_v28  ;;  %1239 = vmatprep.subr.bf16.mxu0 %v1411_v29  ;;  %v1683_v27 = vsub.s32 0, %v555_v25  ;;  %v1183_v25 = vld [vmem:[%s1750_s3] ss:$0 sm:$0xff] }
  0x54   :  { %1261 = vmatprep.subr.bf16.mxu1 %v1412_v30 }
  0x56   :  { %1240 = vmatpush3.bf16.msra.mxu0 %v1413_v31 }
  0x57   :  { %1262 = vmatpush3.bf16.msra.mxu1 %v1414_v32  ;;  %1331 = vmatprep.subr.bf16.mxu0 %v1568_v0 }
  0x59   :  { %445 = vmatmul.mubr.bf16.vlgmr.msra.gmra.mrb[0].mxu0 %v87_v45 }
  0x5a   :  { %486 = vmatmul.mubr.bf16.vlgmr.msra.gmra.mrb[0].mxu1 %v89_v43  ;;  %1332 = vmatpush3.bf16.msra.mxu0 %v1415_v35 }
  0x5b   :  { %1333 = vmatprep.subr.bf16.mxu0 %v1568_v0  ;;  %1347 = vmatprep.mubr.msk.bf16.mxu0 %vm1569_vm0, %v1568_v0 }
  0x5e   :  { %1334 = vmatpush3.bf16.msra.mxu0 %v1416_v46  ;;  %v1423_v46 = vld [vmem:[#allocation8 + $0x40] sm:$0xff]  }
  0x5f   :  { %1335 = vmatprep.subr.bf16.mxu0 %v1568_v0  ;;  %1278 = vmatprep.subr.bf16.mxu1 %v1423_v46 }
  0x62   :  { %1336 = vmatpush3.bf16.msra.mxu0 %v1417_v47  ;;  %v1424_v47 = vld [vmem:[#allocation8] sm:$0xff]  }
  0x63   :  { %1337 = vmatprep.subr.bf16.mxu0 %v1568_v0  ;;  %1279 = vmatpush3.bf16.msra.mxu1 %v1424_v47  ;;  %v1457_v47 = vld [vmem:[#allocation8 + $0x110] sm:$0xff]  }
  0x66   :  { %1338 = vmatpush3.bf16.msra.mxu0 %v1418_v48  ;;  %v1425_v48 = vld [vmem:[#allocation8 + $0xc0] sm:$0xff]  }
  0x67   :  { %1339 = vmatprep.subr.bf16.mxu0 %v1568_v0 }
  0x6a   :  { %1340 = vmatpush3.bf16.msra.mxu0 %v1419_v49  ;;  %v1426_v49 = vld [vmem:[#allocation8 + $0x80] sm:$0xff]  }
  0x6b   :  { %1341 = vmatprep.subr.bf16.mxu0 %v1568_v0 }
  0x6e   :  { %1342 = vmatpush3.bf16.msra.mxu0 %v1420_v50  ;;  %v1427_v50 = vld [vmem:[#allocation8 + $0x48] sm:$0xff]  }
  0x6f   :  { %1343 = vmatprep.subr.bf16.mxu0 %v1568_v0  ;;  %1280 = vmatprep.subr.bf16.mxu1 %v1427_v50  ;;  %v1460_v50 = vld [vmem:[#allocation8 + $0x128] sm:$0xff]  }
  0x72   :  { %1344 = vmatpush3.bf16.msra.mxu0 %v1421_v51  ;;  %v1428_v51 = vld [vmem:[#allocation8 + $0x8] sm:$0xff]  }
  0x73   :  { %1345 = vmatprep.subr.bf16.mxu0 %v1568_v0  ;;  %1281 = vmatpush3.bf16.msra.mxu1 %v1428_v51  ;;  %v1461_v51 = vld [vmem:[#allocation8 + $0x130] sm:$0xff]  }
  0x76   :  { %1346 = vmatpush3.bf16.msra.mxu0 %v1422_v52  ;;  %v1429_v52 = vld [vmem:[#allocation8 + $0xc8] sm:$0xff]  }
  0x77   :  { %1300 = vmatprep.subr.bf16.mxu0 %v1425_v48  ;;  %v1458_v48 = vld [vmem:[#allocation8 + $0x118] sm:$0xff]  }
  0x79   :  { %1348 = vmatmul.mubr.bf16.vlgmr.msra.gmra.mrb[4].mxu0 %v91_v55 }
  0x7a   :  { %1301 = vmatpush3.bf16.msra.mxu0 %v1426_v49  ;;  %v1459_v49 = vld [vmem:[#allocation8 + $0x120] sm:$0xff]  }
  0x7b   :  { %1302 = vmatprep.subr.bf16.mxu0 %v1429_v52  ;;  %v1462_v52 = vld [vmem:[#allocation8 + $0x138] sm:$0xff]  }
  0x7e   :  { %1303 = vmatpush3.bf16.msra.mxu0 %v1430_v54 }
 0x12c   :  { %v1241_v56 = vpop.f32.mrb[0].mxu0 }
 0x12d   :  { %v1263_v57 = vpop.f32.mrb[0].mxu1  ;;  %v1242_v58 = vpop.f32.mrb[1].mxu0 }
 0x12e   :  { %v1243_v59 = vadd.f32 %v1242_v58, %v1241_v56  ;;  %v1264_v60 = vpop.f32.mrb[1].mxu1  ;;  %v1244_v61 = vpop.f32.mrb[2].mxu0  ;;  %v1431_v56 = vld [vmem:[#allocation8 + $0x50] sm:$0xff]  }
 0x12f   :  { %v1265_v62 = vadd.f32 %v1264_v60, %v1263_v57  ;;  %v1266_v63 = vpop.f32.mrb[2].mxu1  ;;  %v1245_v1 = vpop.f32.mrb[3].mxu0  ;;  %v1432_v57 = vld [vmem:[#allocation8 + $0x10] sm:$0xff]   ;;  %1282 = vmatprep.subr.bf16.mxu1 %v1431_v56  ;;  %v1435_v60 = vld [vmem:[#allocation8 + $0x58] sm:$0xff]  }
 0x130   :  { %v1246_v2 = vadd.f32 %v1245_v1, %v1244_v61  ;;  %v1267_v3 = vpop.f32.mrb[3].mxu1  ;;  %v1433_v58 = vld [vmem:[#allocation8 + $0xd0] sm:$0xff]   ;;  %1283 = vmatpush3.bf16.msra.mxu1 %v1432_v57  ;;  %v1436_v61 = vld [vmem:[#allocation8 + $0x18] sm:$0xff]   ;;  %v1439_v1 = vld [vmem:[#allocation8 + $0x60] sm:$0xff]  }
 0x131   :  { %v1268_v4 = vadd.f32 %v1267_v3, %v1266_v63  ;;  %v488_v5 = vadd.f32 %v1265_v62, %v1243_v59  ;;  %v1434_v59 = vld [vmem:[#allocation8 + $0x90] sm:$0xff]   ;;  %1304 = vmatprep.subr.bf16.mxu0 %v1433_v58  ;;  %v1437_v62 = vld [vmem:[#allocation8 + $0xd8] sm:$0xff]   ;;  %1284 = vmatprep.subr.bf16.mxu1 %v1435_v60  ;;  %v1441_v3 = vld [vmem:[#allocation8 + $0xe0] sm:$0xff]  }
 0x132   :  { %1305 = vmatpush3.bf16.msra.mxu0 %v1434_v59  ;;  %v1438_v63 = vld [vmem:[#allocation8 + $0x98] sm:$0xff]  }
 0x133   :  { %v491_v6 = vadd.f32 %v1268_v4, %v1246_v2  ;;  %1306 = vmatprep.subr.bf16.mxu0 %v1437_v62  ;;  %v1440_v2 = vld [vmem:[#allocation8 + $0x20] sm:$0xff]  }
 0x134   :  { %1285 = vmatpush3.bf16.msra.mxu1 %v1436_v61  ;;  %v1442_v4 = vld [vmem:[#allocation8 + $0xa0] sm:$0xff]  }
 0x135   :  { %1286 = vmatprep.subr.bf16.mxu1 %v1439_v1 }
 0x136   :  { %1307 = vmatpush3.bf16.msra.mxu0 %v1438_v63 }
 0x137   :  { %1308 = vmatprep.subr.bf16.mxu0 %v1441_v3 }
 0x138   :  { %1287 = vmatpush3.bf16.msra.mxu1 %v1440_v2 }
 0x13a   :  { %1309 = vmatpush3.bf16.msra.mxu0 %v1442_v4 }
 0x14c   :  { %v528_v7 = vpop.f32.mrb[4].mxu0 }
 0x14d   :  { %v529_v8 = vadd.f32 %v528_v7, %v488_v5  ;;  %v1349_v9 = vpop.f32.mrb[5].mxu0  ;;  %v1443_v5 = vld [vmem:[#allocation8 + $0x68] sm:$0xff]  }
 0x14e   :  { %v531_v10 = vpop.f32.mrb[6].mxu0  ;;  %v1445_v7 = vld [vmem:[#allocation8 + $0xe8] sm:$0xff]   ;;  %1288 = vmatprep.subr.bf16.mxu1 %v1443_v5  ;;  %v1447_v9 = vld [vmem:[#allocation8 + $0x70] sm:$0xff]  }
 0x14f   :  { %v532_v11 = vadd.f32 %v531_v10, %v491_v6  ;;  %v1350_v12 = vpop.f32.mrb[7].mxu0  ;;  %v1444_v6 = vld [vmem:[#allocation8 + $0x28] sm:$0xff]   ;;  %1310 = vmatprep.subr.bf16.mxu0 %v1445_v7  ;;  %v1448_v10 = vld [vmem:[#allocation8 + $0x30] sm:$0xff]  }
 0x150   :  { %1289 = vmatpush3.bf16.msra.mxu1 %v1444_v6  ;;  %v1450_v12 = vld [vmem:[#allocation8 + $0xb0] sm:$0xff]  }
 0x151   :  { %v537_v13 = vadd.f32 %v532_v11, %v529_v8  ;;  %1290 = vmatprep.subr.bf16.mxu1 %v1447_v9 }
 0x153   :  { %v538_v14 = vrot.slane %v537_v13, 4 }
 0x154   :  { %1291 = vmatpush3.bf16.msra.mxu1 %v1448_v10 }
 0x155   :  { %v539_v15 = vadd.f32 %v538_v14, %v537_v13  ;;  %v1451_v13 = vld [vmem:[#allocation8 + $0x78] sm:$0xff]  }
 0x156   :  { %v1453_v14 = vld [vmem:[#allocation8 + $0xf8] sm:$0xff]   ;;  %1292 = vmatprep.subr.bf16.mxu1 %v1451_v13 }
 0x157   :  { %v540_v16 = vrot.slane %v539_v15, 2 }
 0x159   :  { %v541_v17 = vadd.f32 %v540_v16, %v539_v15  ;;  %v1452_v15 = vld [vmem:[#allocation8 + $0x38] sm:$0xff]  }
 0x15a   :  { %v1454_v16 = vld [vmem:[#allocation8 + $0xb8] sm:$0xff]   ;;  %1293 = vmatpush3.bf16.msra.mxu1 %v1452_v15 }
 0x15b   :  { %v542_v18 = vrot.slane %v541_v17, 1  ;;  %1351 = vmatprep.subr.bf16.mxu1 %v1568_v0 }
 0x15d   :  { %v543_v19 = vadd.f32 %v542_v18, %v541_v17 }
 0x15f   :  { %544 = vrot.lane.b32.xlu0 %v543_v19, %s1562_s11 }
 0x1d1   :  { %v545_v20 = vpop.permute.xlu0 %544 }
 0x1d2   :  { %v546_v21 = vadd.f32 %v545_v20, %v543_v19 }
 0x1d4   :  { %547 = vrot.lane.b32.xlu0 %v546_v21, %s1570_s4 }
 0x246   :  { %v548_v22 = vpop.permute.xlu0 %547 }
 0x247   :  { %v549_v23 = vadd.f32 %v548_v22, %v546_v21  ;;  %v535_v21 = vld [vmem:[%s1749_s2] sm:$0x1] }
 0x249   :  { %550 = vrot.lane.b32.xlu1 %v549_v23, %s1571_s12 }
 0x2bb   :  { %v551_v26 = vpop.permute.xlu1 %550 }
 0x2bc   :  { %v552_v28 = vadd.f32 %v551_v26, %v549_v23 }
 0x2be   :  { %v553_v29 = vmul.f32 0.0078125, %v552_v28 }
 0x2c0   :  { %v557_v30 = vrot.slane %v553_v29, %v1683_v27 }
 0x2c2   :  { %v1686_v31 = vsub.f32 %v529_v8, %v557_v30  ;;  %v1688_v32 = vsub.f32 %v532_v11, %v557_v30  ;;  %v1446_v8 = vld [vmem:[#allocation8 + $0xa8] sm:$0xff]   ;;  %v1449_v11 = vld [vmem:[#allocation8 + $0xf0] sm:$0xff]  }
 0x2c3   :  { %1311 = vmatpush3.bf16.msra.mxu0 %v1446_v8 }
 0x2c4   :  { %v560_v35 = vmul.f32 %v1686_v31, %v1686_v31  ;;  %v561_v36 = vmul.f32 %v1688_v32, %v1688_v32  ;;  %1312 = vmatprep.subr.bf16.mxu0 %v1449_v11 }
 0x2c6   :  { %v562_v37 = vadd.f32 %v561_v36, %v560_v35 }
 0x2c7   :  { %1313 = vmatpush3.bf16.msra.mxu0 %v1450_v12 }
 0x2c8   :  { %v563_v38 = vrot.slane %v562_v37, 4  ;;  %1314 = vmatprep.subr.bf16.mxu0 %v1453_v14 }
 0x2ca   :  { %v564_v39 = vadd.f32 %v563_v38, %v562_v37  ;;  %v1455_v37 = vld [vmem:[#allocation8 + $0x100] sm:$0xff]  }
 0x2cb   :  { %1315 = vmatpush3.bf16.msra.mxu0 %v1454_v16 }
 0x2cc   :  { %v565_v40 = vrot.slane %v564_v39, 2 }
 0x2ce   :  { %v566_v41 = vadd.f32 %v565_v40, %v564_v39 }
 0x2d0   :  { %v567_v42 = vrot.slane %v566_v41, 1 }
 0x2d2   :  { %v568_v43 = vadd.f32 %v567_v42, %v566_v41 }
 0x2d4   :  { %569 = vrot.lane.b32.xlu1 %v568_v43, %s1562_s11 }
 0x346   :  { %v570_v44 = vpop.permute.xlu1 %569 }
 0x347   :  { %v571_v45 = vadd.f32 %v570_v44, %v568_v43 }
 0x349   :  { %572 = vrot.lane.b32.xlu0 %v571_v45, %s1570_s4 }
 0x3bb   :  { %v573_v53 = vpop.permute.xlu0 %572 }
 0x3bc   :  { %v574_v55 = vadd.f32 %v573_v53, %v571_v45 }
 0x3be   :  { %575 = vrot.lane.b32.xlu1 %v574_v55, %s1571_s12 }
 0x430   :  { %v576_v17 = vpop.permute.xlu1 %575 }
 0x431   :  { %v577_v18 = vadd.f32 %v576_v17, %v574_v55 }
 0x433   :  { %v578_v19 = vmul.f32 0.0078125, %v577_v18 }
 0x435   :  { %v579_v20 = vadd.f32 1e-05, %v578_v19 }
 0x437   :  { %1463 = vrsqrt.f32 %v579_v20 }
 0x441   :  { %v1464_v22 = vpop.eup %1463 }
 0x442   :  { %v581_v23 = vmul.f32 %v1464_v22, %v535_v21 }
 0x444   :  { %v585_v24 = vrot.slane %v581_v23, %v1683_v27 }
 0x446   :  { %v586_v26 = vmul.f32 %v585_v24, %v1686_v31  ;;  %v587_v28 = vmul.f32 %v585_v24, %v1688_v32  ;;  %v1456_v32 = vld [vmem:[#allocation8 + $0x108] sm:$0xff]  }
 0x448   :  { %v594_v29 = vadd.f32 %v1183_v25, %v586_v26  ;;  %v595_v30 = vadd.f32 %v1183_v25, %v587_v28 }
 0x44a   :  { %v596_v35 = vmax.f32 %v594_v29, 0.0  ;;  %v597_v36 = vmax.f32 %v595_v30, 0.0 }
 0x44c   :  { %598 = vst [vmem:[#allocation2 + $0x2] sm:$0xff] %v596_v35  ;;  %599 = vst [vmem:[#allocation2 + $0x12] sm:$0xff] %v597_v36  ;;  %v612_v31 = vpack.c.bf16 %v597_v36, %v596_v35 }
 0x453   :  { %v602_v38 = vld [vmem:[#allocation2 + $0x1] sm:$0xff]  ;;  %v603_v39 = vld [vmem:[#allocation2 + $0x11] sm:$0xff] }
 0x454   :  { %v606_v40 = vld [vmem:[#allocation2 + $0x3] sm:$0xff]  ;;  %v611_v41 = vpack.c.bf16 %v603_v39, %v602_v38  ;;  %v607_v42 = vld [vmem:[#allocation2 + $0x13] sm:$0xff] }
 0x455   :  { %v600_v43 = vld [vmem:[#allocation2] sm:$0xff]  ;;  %v601_v44 = vld [vmem:[#allocation2 + $0x10] sm:$0xff]  ;;  %v613_v45 = vpack.c.bf16 %v607_v42, %v606_v40 }
 0x456   :  { %v610_v46 = vpack.c.bf16 %v601_v44, %v600_v43  ;;  %967 = vmatprep.mubr.bf16.mxu1 %v611_v41  ;;  %v608_v53 = vld [vmem:[#allocation2 + $0x4] sm:$0xff]  ;;  %v609_v54 = vld [vmem:[#allocation2 + $0x14] sm:$0xff] }
 0x457   :  { %1008 = vmatprep.mubr.bf16.mxu0 %v613_v45  ;;  %v614_v55 = vpack.c.bf16 %v609_v54, %v608_v53  ;;  %v1224_v53 = vld [vmem:[%s1753_s6] ss:$0 sm:$0xff] }
 0x458   :  { %968 = vmatmul.mubr.bf16.vlgmr.msra.gmra.mrb[4].mxu1 %v610_v46  ;;  %1009 = vmatmul.mubr.bf16.vlgmr.msra.gmra.mrb[8].mxu0 %v612_v31 }
 0x459   :  { %1352 = vmatpush3.bf16.msra.mxu1 %v1455_v37  ;;  %1367 = vmatprep.mubr.msk.bf16.mxu1 %vm1569_vm0, %v1568_v0 }
 0x45a   :  { %1353 = vmatprep.subr.bf16.mxu1 %v1568_v0 }
 0x45d   :  { %1354 = vmatpush3.bf16.msra.mxu1 %v1456_v32 }
 0x45e   :  { %1355 = vmatprep.subr.bf16.mxu1 %v1568_v0 }
 0x461   :  { %1356 = vmatpush3.bf16.msra.mxu1 %v1457_v47 }
 0x462   :  { %1357 = vmatprep.subr.bf16.mxu1 %v1568_v0 }
 0x465   :  { %1358 = vmatpush3.bf16.msra.mxu1 %v1458_v48 }
 0x466   :  { %1359 = vmatprep.subr.bf16.mxu1 %v1568_v0 }
 0x469   :  { %1360 = vmatpush3.bf16.msra.mxu1 %v1459_v49  ;;  %v1058_v49 = vld [vmem:[%s1752_s5] sm:$0x1]  ;;  %s1533_s5 = scalar_lea.vmem %s1131_s24, 256 }
 0x46a   :  { %1361 = vmatprep.subr.bf16.mxu1 %v1568_v0  ;;  %p1534_p10 = scmp.ne.s32.totalorder %s1131_s24, %s1533_s5  ;;  %p1539_p12 = scmp.lt.s32.totalorder %s1533_s5, %s1533_s5 }
 0x46c   :  { %p1540_p13 = por %p1539_p12, %p1538_p11 }
 0x46d   :  { %1362 = vmatpush3.bf16.msra.mxu1 %v1460_v50 }
 0x46e   :  { %1363 = vmatprep.subr.bf16.mxu1 %v1568_v0  ;;  %p1541_p0 = pnand %p1540_p13, %p1534_p10 }
 0x471   :  { %1364 = vmatpush3.bf16.msra.mxu1 %v1461_v51 }
 0x472   :  { %1365 = vmatprep.subr.bf16.mxu1 %v1568_v0 }
 0x475   :  { %1366 = vmatpush3.bf16.msra.mxu1 %v1462_v52 }
 0x478   :  { %1368 = vmatmul.mubr.bf16.vlgmr.msra.gmra.mrb[8].mxu1 %v614_v55 }
 0x52b   :  { %v1294_v56 = vpop.f32.mrb[4].mxu1  ;;  %v1316_v57 = vpop.f32.mrb[8].mxu0 }
 0x52c   :  { %v1295_v58 = vpop.f32.mrb[5].mxu1  ;;  %v1317_v60 = vpop.f32.mrb[9].mxu0 }
 0x52d   :  { %v1296_v59 = vadd.f32 %v1295_v58, %v1294_v56  ;;  %v1297_v61 = vpop.f32.mrb[6].mxu1  ;;  %v1318_v62 = vadd.f32 %v1317_v60, %v1316_v57  ;;  %v1319_v63 = vpop.f32.mrb[10].mxu0 }
 0x52e   :  { %v1298_v1 = vpop.f32.mrb[7].mxu1  ;;  %v1320_v3 = vpop.f32.mrb[11].mxu0 }
 0x52f   :  { %v1299_v2 = vadd.f32 %v1298_v1, %v1297_v61  ;;  %v1321_v4 = vadd.f32 %v1320_v3, %v1319_v63  ;;  %v1011_v5 = vadd.f32 %v1318_v62, %v1296_v59 }
 0x531   :  { %v1014_v6 = vadd.f32 %v1321_v4, %v1299_v2 }
 0x54b   :  { %v1051_v0 = vpop.f32.mrb[8].mxu1 }
 0x54c   :  { %v1052_v7 = vadd.f32 %v1051_v0, %v1011_v5  ;;  %v1369_v8 = vpop.f32.mrb[9].mxu1 }
 0x54d   :  { %v1054_v9 = vpop.f32.mrb[10].mxu1 }
 0x54e   :  { %v1055_v10 = vadd.f32 %v1054_v9, %v1014_v6  ;;  %v1370_v11 = vpop.f32.mrb[11].mxu1 }
 0x550   :  { %v1060_v12 = vadd.f32 %v1055_v10, %v1052_v7 }
 0x552   :  { %v1061_v13 = vrot.slane %v1060_v12, 4 }
 0x554   :  { %v1062_v14 = vadd.f32 %v1061_v13, %v1060_v12 }
 0x556   :  { %v1063_v15 = vrot.slane %v1062_v14, 2 }
 0x558   :  { %v1064_v16 = vadd.f32 %v1063_v15, %v1062_v14 }
 0x55a   :  { %v1065_v17 = vrot.slane %v1064_v16, 1 }
 0x55c   :  { %v1066_v18 = vadd.f32 %v1065_v17, %v1064_v16 }
 0x55e   :  { %1067 = vrot.lane.b32.xlu0 %v1066_v18, %s1562_s11 }
 0x5d0   :  { %v1068_v19 = vpop.permute.xlu0 %1067 }
 0x5d1   :  { %v1069_v20 = vadd.f32 %v1068_v19, %v1066_v18 }
 0x5d3   :  { %1070 = vrot.lane.b32.xlu1 %v1069_v20, %s1570_s4 }
 0x645   :  { %v1071_v21 = vpop.permute.xlu1 %1070 }
 0x646   :  { %v1072_v22 = vadd.f32 %v1071_v21, %v1069_v20 }
 0x648   :  { %1073 = vrot.lane.b32.xlu0 %v1072_v22, %s1571_s12 }
 0x6ba   :  { %v1074_v23 = vpop.permute.xlu0 %1073 }
 0x6bb   :  { %v1075_v24 = vadd.f32 %v1074_v23, %v1072_v22 }
 0x6bd   :  { %v1076_v25 = vmul.f32 0.0078125, %v1075_v24 }
 0x6bf   :  { %v1080_v26 = vrot.slane %v1076_v25, %v1683_v27 }
 0x6c1   :  { %v1081_v28 = vsub.f32 %v1052_v7, %v1080_v26  ;;  %v1082_v29 = vsub.f32 %v1055_v10, %v1080_v26 }
 0x6c3   :  { %v1083_v30 = vmul.f32 %v1081_v28, %v1081_v28  ;;  %v1084_v35 = vmul.f32 %v1082_v29, %v1082_v29 }
 0x6c5   :  { %v1085_v36 = vadd.f32 %v1084_v35, %v1083_v30 }
 0x6c7   :  { %v1086_v37 = vrot.slane %v1085_v36, 4 }
 0x6c9   :  { %v1087_v38 = vadd.f32 %v1086_v37, %v1085_v36 }
 0x6cb   :  { %v1088_v39 = vrot.slane %v1087_v38, 2 }
 0x6cd   :  { %v1089_v40 = vadd.f32 %v1088_v39, %v1087_v38 }
 0x6cf   :  { %v1090_v41 = vrot.slane %v1089_v40, 1 }
 0x6d1   :  { %v1091_v42 = vadd.f32 %v1090_v41, %v1089_v40 }
 0x6d3   :  { %1092 = vrot.lane.b32.xlu1 %v1091_v42, %s1562_s11 }
 0x745   :  { %v1093_v43 = vpop.permute.xlu1 %1092 }
 0x746   :  { %v1094_v44 = vadd.f32 %v1093_v43, %v1091_v42 }
 0x748   :  { %1095 = vrot.lane.b32.xlu0 %v1094_v44, %s1570_s4 }
 0x7ba   :  { %v1096_v45 = vpop.permute.xlu0 %1095 }
 0x7bb   :  { %v1097_v46 = vadd.f32 %v1096_v45, %v1094_v44 }
 0x7bd   :  { %1098 = vrot.lane.b32.xlu1 %v1097_v46, %s1571_s12 }
 0x82f   :  { %v1099_v31 = vpop.permute.xlu1 %1098 }
 0x830   :  { %v1100_v32 = vadd.f32 %v1099_v31, %v1097_v46 }
 0x832   :  { %v1101_v47 = vmul.f32 0.0078125, %v1100_v32 }
 0x834   :  { %v1102_v48 = vadd.f32 1e-05, %v1101_v47 }
 0x836   :  { %1465 = vrsqrt.f32 %v1102_v48 }
 0x840   :  { %v1466_v50 = vpop.eup %1465 }
 0x841   :  { %v1104_v51 = vmul.f32 %v1466_v50, %v1058_v49 }
 0x843   :  { %v1108_v52 = vrot.slane %v1104_v51, %v1683_v27 }
 0x845   :  { %v1109_v54 = vmul.f32 %v1108_v52, %v1081_v28  ;;  %v1110_v55 = vmul.f32 %v1108_v52, %v1082_v29 }
 0x847   :  { %v1117_v56 = vadd.f32 %v1224_v53, %v1109_v54  ;;  %v1118_v57 = vadd.f32 %v1224_v53, %v1110_v55 }
 0x849   :  { %v1119_v58 = vadd.f32 %v1117_v56, %v1662_v33  ;;  %v1120_v59 = vadd.f32 %v1118_v57, %v1664_v34 }
 0x84b   :  { %v1121_v60 = vmax.f32 %v1119_v58, 0.0  ;;  %v1122_v61 = vmax.f32 %v1120_v59, 0.0 }
 0x84d   :  { %1123 = vst [vmem:[#allocation9] sm:$0xff] %v1121_v60  ;;  %1124 = vst [vmem:[#allocation9 + $0x8] sm:$0xff] %v1122_v61 }
 0x84e   :  { %1544 = shalt.err (!%p1541_p0)
}
 0x84f   :  { %s1545_s27 = scalar_lea.hbm %s1754_s7, 256 }
 0x850   :  { %p1546_p1 = scmp.ne.s32.totalorder %s1754_s7, %s1545_s27  ;;  %p1549_p2 = scmp.lt.u32.totalorder %s1545_s27, %s1754_s7 }
 0x852   :  { %p1551_p3 = pnand %p1549_p2, %p1546_p1 }
 0x854   :  { %1554 = shalt.err (!%p1551_p3)
}
 0x855   :  { %1136 = dma.vmem_to_hbm [thread:$0]  %s1131_s24, 256, %s1754_s7, [#allocation5], %s1565_s1, %s1565_s1, %s1566_s25  }
 0x856   :  { %1559 = dma.done.wait [#allocation5], 256  }
 0x857   :  { %1560 = vsyncadd [#allocation5], 4294967040 }
 0x858   :  { %1140 = vsyncpa [#allocation4], 1 }
 0x859   :  { %1141 = vsyncpa [#allocation7], 1 }
 0x85a   :  { %1142 = vsyncpa [#allocation5], 1 }

</bundles_post_ra>
